<compile_context>
chip_gen: v5e
topology: v5e:2x2
jax: 0.10.0
libtpu: 0.0.40
codegen_flags: <defaults>
</compile_context>

<pallas_src>
import functools

import jax
import jax.numpy as jnp
from jax.experimental import pallas as pl
from jax.experimental.pallas import tpu as pltpu


def _cdiv(a, b):
    return -(-a // b)


def _tpu_vmem_capacity_bytes():
    """Physical VMEM per TensorCore; conservative fallback if query fails."""
    try:
        return int(pltpu.get_tpu_info().vmem_capacity_bytes)
    except Exception:
        return 64 * 1024 * 1024  # v7x per-core size; safe lower bound


def _group_norm_kernel(x_ref, w_ref, b_ref, o_ref, *, eps):
    # x_ref: (NB, GB, L) block with L = Cg*H*W folded into the lane axis.
    # w_ref / b_ref: (GB, L) per-channel scale/shift pre-broadcast along H*W.
    x = x_ref[...]
    xf = x.astype(jnp.float32)
    n = jnp.float32(x.shape[-1])

    # One-pass sum / sum-of-squares over the lane axis (single sweep of block).
    # TODO(synk): on v7x the two adds/elem could be offloaded to the idle MXU
    # via dot(slab, ones) if the VALU slot ever binds.
    s = jnp.sum(xf, axis=-1, keepdims=True)         # (NB, GB, 1)
    ss = jnp.sum(xf * xf, axis=-1, keepdims=True)   # (NB, GB, 1)
    mean = s / n
    # torch.Tensor.var default: unbiased estimator (divide by n-1).  Clamp at 0
    # to protect rsqrt from catastrophic cancellation in the one-pass formula.
    var = jnp.maximum((ss - s * mean) / (n - 1.0), jnp.float32(0.0))
    inv_std = jax.lax.rsqrt(var + jnp.float32(eps))

    w = w_ref[...][None, :, :]   # (1, GB, L), already f32
    b = b_ref[...][None, :, :]
    # TODO(synk): on v7x with bf16 inputs a packed-bf16 epilogue (stats kept in
    # f32) would roughly halve VALU work; f32 kept for v5e compatibility.
    o_ref[...] = (((xf - mean) * inv_std) * w + b).astype(o_ref.dtype)


def group_norm_2d(x, weight, bias, num_groups, eps=1e-5):
    """GroupNorm for dim=2 (NCHW input), matching _GroupNorm.forward."""
    N, C, H, W = x.shape
    G = int(num_groups)
    assert C % G == 0, "Channel dim must be multiple of number of groups"
    Cg = C // G
    HW = H * W
    L = Cg * HW
    assert L > 1, "unbiased variance undefined with one element per group"

    # Lane-dense layout: channels-per-group folded into the lane axis.
    x3 = x.reshape(N, G, L)
    w2 = jnp.broadcast_to(
        weight.reshape(G, Cg, 1).astype(jnp.float32), (G, Cg, HW)).reshape(G, L)
    b2 = jnp.broadcast_to(
        bias.reshape(G, Cg, 1).astype(jnp.float32), (G, Cg, HW)).reshape(G, L)

    itemsize = x.dtype.itemsize
    physical_vmem = _tpu_vmem_capacity_bytes()
    # ~4 MiB blocks on 128 MiB chips (v5e/v6e), ~2 MiB on 64 MiB chips (v7x).
    target_block_bytes = max(1 << 20, min(4 << 20, physical_vmem // 32))

    row_bytes = G * L * itemsize     # one whole batch element
    group_bytes = L * itemsize       # one (n, g) slab

    if row_bytes <= target_block_bytes:
        # Coarse path: NB whole batch elements (all G groups) per grid step.
        NB = max(1, min(N, target_block_bytes // row_bytes))
        # Keep >= 2 grid steps so both v7x TensorCores get work; costs one
        # extra ~0.35us step on single-TC chips, negligible.
        if NB >= N and N >= 2:
            NB = _cdiv(N, 2)
        GB = G
    else:
        # Fallback: one batch element, several groups per step.  The block's
        # second-to-last dim must be a multiple of 8 or the full extent G.
        NB = 1
        GB = max(1, min(G, target_block_bytes // max(group_bytes, 1)))
        if GB < G:
            GB = max(8, (GB // 8) * 8) if G >= 8 else G
            GB = min(GB, G)
        # TODO(synk): for groups whose Cg*HW slab exceeds the VMEM budget, add a
        # two-phase split over HW (accumulate partial s/ss on an "arbitrary"
        # grid axis, then a second normalize sweep).

    grid = (_cdiv(N, NB), _cdiv(G, GB))

    # Explicit VMEM budget: double-buffered in+out blocks, f32 elementwise
    # temps, weight/bias table blocks, plus headroom.
    blk_elems = NB * GB * L
    est = (4 * blk_elems * itemsize      # 2x input + 2x output pipeline buffers
           + 3 * blk_elems * 4           # f32 cast / fused elementwise temps
           + 4 * GB * L * 4              # weight/bias blocks (x2 buffers)
           + (4 << 20))                  # headroom
    vmem_limit = int(min(max(32 << 20, est),
                         max(32 << 20, physical_vmem * 3 // 4)))

    kernel = functools.partial(_group_norm_kernel, eps=eps)
    out3 = pl.pallas_call(
        kernel,
        out_shape=jax.ShapeDtypeStruct((N, G, L), x.dtype),
        grid=grid,
        in_specs=[
            pl.BlockSpec((NB, GB, L), lambda i, j: (i, j, 0)),
            # Constant block index in the coarse path (GB == G): the pipeline
            # fetches these tables once and keeps them resident across steps.
            pl.BlockSpec((GB, L), lambda i, j: (j, 0)),
            pl.BlockSpec((GB, L), lambda i, j: (j, 0)),
        ],
        out_specs=pl.BlockSpec((NB, GB, L), lambda i, j: (i, j, 0)),
        compiler_params=pltpu.CompilerParams(
            dimension_semantics=("parallel", "parallel"),
            vmem_limit_bytes=vmem_limit,
        ),
    )(x3, w2, b2)

    return out3.reshape(N, C, H, W)


def reference_group_norm(x, weight, bias, num_groups, eps=1e-5):
    N, C, H, W = x.shape
    G = num_groups
    xr = x.reshape(N, G, -1).astype(jnp.float32)
    mean = xr.mean(-1, keepdims=True)
    var = xr.var(-1, keepdims=True, ddof=1)  # unbiased, as torch .var default
    xn = (xr - mean) / jnp.sqrt(var + eps)
    xn = xn.reshape(N, C, H, W)
    return (xn * weight + bias).astype(x.dtype)


if __name__ == "__main__":
    key = jax.random.PRNGKey(0)

    # Module config: _GroupNorm(num_features=4, dim=2, num_groups=2)
    num_features = 4
    num_groups = 2
    eps = 1e-5

    # Parameters per __init__: weight = ones, bias = zeros, shape (1, C, 1, 1)
    weight = jnp.ones((1, num_features, 1, 1), dtype=jnp.float32)
    bias = jnp.zeros((1, num_features, 1, 1), dtype=jnp.float32)

    # Input: NCHW
    x = jax.random.normal(key, (2, num_features, 16, 16), dtype=jnp.float32)

    out = group_norm_2d(x, weight, bias, num_groups, eps)
    out = jax.block_until_ready(out)

    ref = reference_group_norm(x, weight, bias, num_groups, eps)
    assert out.shape == x.shape
    assert jnp.allclose(out, ref, atol=1e-4, rtol=1e-5), "mismatch vs reference"

    print("KERNEL_OK")
</pallas_src>

<mosaic_0001>
module attributes {stable_mosaic.version = 11 : i64} {
  func.func @_group_norm_kernel(%arg0: i32, %arg1: i32, %arg2: memref<1x2x512xf32, #tpu.memory_space<vmem>>, %arg3: memref<2x512xf32, #tpu.memory_space<vmem>>, %arg4: memref<2x512xf32, #tpu.memory_space<vmem>>, %arg5: memref<1x2x512xf32, #tpu.memory_space<vmem>>) attributes {dimension_semantics = [#tpu.dimension_semantics<parallel>, #tpu.dimension_semantics<parallel>], iteration_bounds = array<i64: 2, 1>, scalar_prefetch = 0 : i64, scratch_operands = 0 : i64, tpu.core_type = #tpu.core_type<tc>, window_params = [{transform_indices = @transform_0, window_bounds = array<i64: 1, 2, 512>}, {transform_indices = @transform_1, window_bounds = array<i64: 2, 512>}, {transform_indices = @transform_2, window_bounds = array<i64: 2, 512>}, {transform_indices = @transform_3, window_bounds = array<i64: 1, 2, 512>}]} {
    %c0 = arith.constant 0 : index
    %c0_0 = arith.constant 0 : index
    %c0_1 = arith.constant 0 : index
    %0 = vector.load %arg2[%c0, %c0_0, %c0_1] : memref<1x2x512xf32, #tpu.memory_space<vmem>>, vector<1x2x512xf32>
    %cst = arith.constant dense<0.000000e+00> : vector<1x2xf32>
    %1 = vector.multi_reduction <add>, %0, %cst [2] : vector<1x2x512xf32> to vector<1x2xf32>
    %2 = vector.shape_cast %1 : vector<1x2xf32> to vector<1x2x1xf32>
    %3 = arith.mulf %0, %0 : vector<1x2x512xf32>
    %cst_2 = arith.constant dense<0.000000e+00> : vector<1x2xf32>
    %4 = vector.multi_reduction <add>, %3, %cst_2 [2] : vector<1x2x512xf32> to vector<1x2xf32>
    %5 = vector.shape_cast %4 : vector<1x2xf32> to vector<1x2x1xf32>
    %cst_3 = arith.constant 5.120000e+02 : f32
    %6 = vector.broadcast %cst_3 : f32 to vector<1x2x1xf32>
    %7 = arith.divf %2, %6 : vector<1x2x1xf32>
    %8 = arith.mulf %2, %7 : vector<1x2x1xf32>
    %9 = arith.subf %5, %8 : vector<1x2x1xf32>
    %cst_4 = arith.constant 5.120000e+02 : f32
    %cst_5 = arith.constant 1.000000e+00 : f32
    %10 = arith.subf %cst_4, %cst_5 : f32
    %11 = vector.broadcast %10 : f32 to vector<1x2x1xf32>
    %12 = arith.divf %9, %11 : vector<1x2x1xf32>
    %cst_6 = arith.constant 0.000000e+00 : f32
    %13 = vector.broadcast %cst_6 : f32 to vector<1x2x1xf32>
    %14 = arith.maximumf %12, %13 : vector<1x2x1xf32>
    %cst_7 = arith.constant 9.99999974E-6 : f32
    %15 = vector.broadcast %cst_7 : f32 to vector<1x2x1xf32>
    %16 = arith.addf %14, %15 : vector<1x2x1xf32>
    %17 = math.rsqrt %16 : vector<1x2x1xf32>
    %c0_8 = arith.constant 0 : index
    %c0_9 = arith.constant 0 : index
    %18 = vector.load %arg3[%c0_8, %c0_9] : memref<2x512xf32, #tpu.memory_space<vmem>>, vector<2x512xf32>
    %19 = vector.shape_cast %18 : vector<2x512xf32> to vector<1x2x512xf32>
    %c0_10 = arith.constant 0 : index
    %c0_11 = arith.constant 0 : index
    %20 = vector.load %arg4[%c0_10, %c0_11] : memref<2x512xf32, #tpu.memory_space<vmem>>, vector<2x512xf32>
    %21 = vector.shape_cast %20 : vector<2x512xf32> to vector<1x2x512xf32>
    %22 = vector.broadcast %7 : vector<1x2x1xf32> to vector<1x2x512xf32>
    %23 = arith.subf %0, %22 : vector<1x2x512xf32>
    %24 = vector.broadcast %17 : vector<1x2x1xf32> to vector<1x2x512xf32>
    %25 = arith.mulf %23, %24 : vector<1x2x512xf32>
    %26 = arith.mulf %25, %19 : vector<1x2x512xf32>
    %27 = arith.addf %26, %21 : vector<1x2x512xf32>
    %c0_12 = arith.constant 0 : index
    %c0_13 = arith.constant 0 : index
    %c0_14 = arith.constant 0 : index
    %28 = vector.load %arg5[%c0_12, %c0_13, %c0_14] : memref<1x2x512xf32, #tpu.memory_space<vmem>>, vector<1x2x512xf32>
    tpu.vector_store %arg5[%c0_12, %c0_13, %c0_14], %27 {strides = array<i32>} : memref<1x2x512xf32, #tpu.memory_space<vmem>>, vector<1x2x512xf32>,
    return
  }
  func.func @transform_0(%arg0: i32, %arg1: i32) -> (i32, i32, i32) {
    %c0_i32 = arith.constant 0 : i32
    %c0_i32_0 = arith.constant 0 : i32
    return %arg0, %arg1, %c0_i32 : i32, i32, i32
  }
  func.func @transform_1(%arg0: i32, %arg1: i32) -> (i32, i32) {
    %c0_i32 = arith.constant 0 : i32
    %c0_i32_0 = arith.constant 0 : i32
    return %arg1, %c0_i32 : i32, i32
  }
  func.func @transform_2(%arg0: i32, %arg1: i32) -> (i32, i32) {
    %c0_i32 = arith.constant 0 : i32
    %c0_i32_0 = arith.constant 0 : i32
    return %arg1, %c0_i32 : i32, i32
  }
  func.func @transform_3(%arg0: i32, %arg1: i32) -> (i32, i32, i32) {
    %c0_i32 = arith.constant 0 : i32
    %c0_i32_0 = arith.constant 0 : i32
    return %arg0, %arg1, %c0_i32 : i32, i32, i32
  }
}

</mosaic_0001>

<bundles_post_ra>
// kernel: tpu_custom_call.1
= control target key start
LH: loop header
LB: loop body
LE: loop exit
PB: predicated region body
PF: predicated region fallthrough
CT: control target
= control target key end

     0   :  { %8 = vsyncpa [#allocation3], 0  ;;  %s944_s0 = inlined_call_operand.hbm [shape: f32[2,2,512], index: 0, kind: input, shape index: {}]   ;;  %s945_s1 = inlined_call_operand.hbm [shape: f32[2,512], index: 1, kind: input, shape index: {}]   ;;  %s946_s2 = inlined_call_operand.hbm [shape: f32[2,512], index: 2, kind: input, shape index: {}]   ;;  %s947_s3 = inlined_call_operand.hbm [shape: f32[2,2,512], index: 3, kind: output, shape index: {}]  }
   0x1   :  { %10 = vsyncpa [#allocation3 + $0x1], 0 }
   0x2   :  { %11 = vsyncpa [#allocation6], 0 }
   0x3   :  { %12 = vsyncpa [#allocation4], 0 }
   0x4   :  { %14 = vsyncpa [#allocation4 + $0x1], 0  ;;  %s784_s12 = smov 0   ;;  %s786_s13 = smov 0  }
   0x5   :  { %s788_s14 = smov 0   ;;  %s790_s15 = smov 0  }
   0x6   :  { %s792_s16 = smov 0   ;;  %s794_s17 = smov 0  }
   0x7 LB: > { %s468_s18 = sadd.s32 4294967295, %s757_s17   ;;  %s469_s19 = sadd.s32 4294967294, %s757_s17   ;;  %s757_s17 = sphi %s794_s17, %s20_s17   ;;  %s753_s16 = sphi %s792_s16, %s957_s16   ;;  %s749_s15 = sphi %s790_s15, %s956_s15   ;;  %s745_s14 = sphi %s788_s14, %s955_s14   ;;  %s741_s13 = sphi %s786_s13, %s954_s13   ;;  %s737_s12 = sphi %s784_s12, %s953_s12  }
   0x8   : > { %p54_p0 = scmp.ne.s32.totalorder %s741_s13, %s737_s12  ;;  %p818_p1 = scmp.eq.s32.totalorder %s468_s18, 0 }
   0x9   : > { %p138_p2 = scmp.eq.s32.totalorder %s469_s19, 1  ;;  %p470_p4 = scmp.ge.s32.totalorder %s757_s17, 1 }
   0xa   : > { %p824_p3 = por %p818_p1, %p54_p0  ;;  %p145_p6 = scmp.lt.s32.totalorder %s757_s17, 3 }
   0xb   : > { %p829_p5 = por %p138_p2, %p54_p0  ;;  %s160_s25 = sshll.u32 %s945_s1, 4  ;;  %s161_s25 = int_to_ptr.hbm [resolvable:$true] %s160_s25 }
   0xc   : > { %p837_p7 = pnand %p470_p4, %p145_p6  ;;  %p473_p8 = scmp.ge.s32.totalorder %s757_s17, 2 }
   0xd   : > { %s759_s27 = smov [#allocation5]   ;;  %s175_s4 = sshll.u32 %s946_s2, 4  ;;  %s176_s4 = int_to_ptr.hbm [resolvable:$true] %s175_s4 }
   0xe   : > { %p501_p9 = pneg %p837_p7  ;;  %s162_s28 = sshll.u32 %s759_s27, 4  ;;  %s163_s28 = int_to_ptr.vmem [resolvable:$true] %s162_s28 }
   0xf   : > { %s760_s5 = smov [#allocation7]   ;;  %p132_p11 = scmp.eq.s32.totalorder %s468_s18, 1 }
  0x10   : > { %p502_p10 = pnand %p501_p9, %p818_p1  ;;  %s177_s6 = sshll.u32 %s760_s5, 4  ;;  %s178_s6 = int_to_ptr.vmem [resolvable:$true] %s177_s6 }
  0x11   : > { %s32_s7 = sadd.s32 1, %s753_s16  ;;  %s41_s8 = sadd.s32 1, %s745_s14 }
  0x12   : > { %504 = dma.hbm_to_vmem [thread:$0]  (!%p502_p10), %s161_s25, 128, %s163_s28, [#allocation6]  }
  0x13   : > { %507 = dma.hbm_to_vmem [thread:$0]  (!%p502_p10), %s176_s4, 128, %s178_s6, [#allocation6]  }
  0x14   : > { %p34_p12 = scmp.ge.s32.totalorder %s32_s7, 2  ;;  %p48_p13 = scmp.ne.s32.totalorder %s745_s14, %s741_s13 }
  0x15   : > { %p49_p0 = scmp.eq.s32.totalorder %s757_s17, 0  ;;  %p518_p4 = scmp.lt.s32.totalorder %s757_s17, 2 }
  0x16   : > { %s959_s7 = smov (%p34_p12, %s32_s7), 0  ;;  %p856_p2 = por %p132_p11, %p48_p13 }
  0x17   : > { %s36_s10 = ssub.s32 %s753_s16, %s959_s7  ;;  %s188_s11 = sand.u32 1, %s745_s14  }
  0x18   : > { %p39_p6 = scmp.eq.s32.totalorder %s36_s10, 0  ;;  %p50_p9 = por %p49_p0, %p48_p13 }
  0x19   : > { %s474_s19 = sshll.u32 %s188_s11, 3  ;;  %s487_s18 = sshll.u32 %s753_s16, 3 }
  0x1a   : > { %s866_s23 = scalar_select %p39_p6, %s745_s14, %s41_s8  }
  0x1b   : > { %s199_s27 = scalar_lea.hbm %s944_s0, %s487_s18  ;;  %s192_s29 = scalar_lea.vmem [#allocation2], %s474_s19 }
  0x1c   : > { %s201_s28 = sshll.u32 %s199_s27, 4  ;;  %s203_s30 = sshll.u32 %s192_s29, 4  ;;  %s202_s28 = int_to_ptr.hbm [resolvable:$true] %s201_s28  ;;  %s204_s30 = int_to_ptr.vmem [resolvable:$true] %s203_s30 }
  0x1d   : > { %p509_p10 = pnand %p518_p4, %p50_p9  ;;  %s189_s4 = scalar_lea.sflag [#allocation3], %s188_s11 }
  0x1e   : > { %212 = sbr.rel (%p837_p7) target bundleno = 217 (0xd9), region = 32  ;;  %s876_s5 = sand.u32 (!%p837_p7), 1, %s741_s13  }
  0x1f   : > { %511 = dma.hbm_to_vmem [thread:$0]  (!%p509_p10), %s202_s28, 128, %s204_s30, %s189_s4  }
  0x20   : > { %s478_s6 = sshll.u32 (!%p837_p7), %s876_s5, 3  ;;  %s215_s8 = scalar_lea.sflag (!%p837_p7), [#allocation3], %s876_s5 }
  0x21   : > { %s218_s10 = scalar_lea.vmem (!%p837_p7), [#allocation2], %s478_s6 }
  0x23   : > { %724 = dma.done.wait (%p824_p3), %s215_s8, 128  }
  0x24   : > { %726 = vsyncadd (%p824_p3), %s215_s8, 4294967168 }
  0x25   : > { %728 = dma.done.wait (%p818_p1), [#allocation6], 256  }
  0x26   : > { %730 = vsyncadd (%p818_p1), [#allocation6], 4294967040  ;;  %v890_v0 = vld [vmem:[%s218_s10] sm:$0xff]  ;;  %vm263_vm0 = vcmask 1041408   ;;  %v761_v24 = vmov 512.0   ;;  %v762_v26 = vmov 511.0  }
  0x27   : > { %254 = vst [vmem:[#allocation1] ss:$4 sm:$0xff] %v890_v0  ;;  %v273_v1 = vmul.f32 %v890_v0, %v890_v0  ;;  %575 = vrcp.f32 %v761_v24  ;;  %v763_v47 = vmov 269488144   ;;  %s488_s20 = sshll.u32 %s749_s15, 3  ;;  %v323_v59 = vld [vmem:[#allocation5] sm:$0xff] }
  0x28   : > { %577 = vrcp.f32 %v762_v26  ;;  %v327_v48 = vunpack.c.l.s4 %v763_v47  ;;  %s356_s11 = scalar_lea.hbm %s947_s3, %s488_s20  ;;  %v324_v61 = vld [vmem:[#allocation7] sm:$0xff]  ;;  %s251_s19 = scalar_lea.vmem [#allocation8], %s478_s6 }
  0x29   : > { %s358_s18 = sshll.u32 %s251_s19, 4  ;;  %s360_s24 = sshll.u32 %s356_s11, 4  ;;  %s359_s18 = int_to_ptr.vmem [resolvable:$true] %s358_s18  ;;  %s361_s24 = int_to_ptr.hbm [resolvable:$true] %s360_s24 }
  0x2a   : > { %v328_v51 = vunpack.c.0.s8 %v327_v48  ;;  %s343_s15 = scalar_lea.sflag [#allocation4], %s876_s5  ;;  %s685_s25 = sshra.s32 %s361_s24, 4  ;;  %s686_s25 = int_to_ptr.hbm [resolvable:$true] %s685_s25 }
  0x2b   : > { %s687_s27 = scalar_lea.hbm %s686_s25, 8  ;;  %s691_s30 = scalar_lea.hbm %s947_s3, 16 }
  0x2c   : > { %p688_p1 = scmp.ne.s32.totalorder %s686_s25, %s687_s27  ;;  %p692_p11 = scmp.lt.s32.totalorder %s686_s25, %s947_s3 }
  0x2d   : > { %v576_v25 = vpop.eup %575  ;;  %p693_p12 = scmp.lt.s32.totalorder %s691_s30, %s687_s27 }
  0x2e   : > { %v255_v2 = vld.sshfl [vmem:[#allocation1] sm:$0xff pattern:$0x73625140]  ;;  %v256_v3 = vld.sshfl [vmem:[#allocation1 + $0x8] sm:$0xff pattern:$0x73625140]  ;;  %v578_v29 = vpop.eup %577  ;;  %vm298_vm1 = vweird.f32 %v576_v25  ;;  %p689_p3 = pnand %p688_p1, %p856_p2 }
  0x2f   : > { %v257_v4 = vld.sshfl [vmem:[#allocation1 + $0x10] sm:$0xff pattern:$0x73625140]  ;;  %v258_v5 = vld.sshfl [vmem:[#allocation1 + $0x18] sm:$0xff pattern:$0x73625140]  ;;  %vm308_vm2 = vweird.f32 %v578_v29  ;;  %p694_p13 = por %p693_p12, %p692_p11 }
  0x30   : > { %v264_v6 = vsel %vm263_vm0, %v255_v2, 0.0  ;;  %v265_v7 = vsel %vm263_vm0, %v256_v3, 0.0  ;;  %v267_v8 = vsel %vm263_vm0, %v257_v4, 0.0  ;;  %275 = vst [vmem:[#allocation1] ss:$4 sm:$0xff] %v273_v1  ;;  %v269_v10 = vsel %vm263_vm0, %v258_v5, 0.0  ;;  %p690_p7 = pneg %p689_p3 }
  0x31   : > { %v266_v9 = vadd.f32 %v265_v7, %v264_v6  ;;  %v294_v27 = vmul.f32 512.0, %v576_v25  ;;  %v304_v31 = vmul.f32 511.0, %v578_v29 }
  0x32   : > { %p695_p0 = pnand %p694_p13, %p690_p7 }
  0x33   : > { %v268_v11 = vadd.f32 %v267_v8, %v266_v9  ;;  %v295_v28 = vsub.f32 1.0, %v294_v27  ;;  %v305_v33 = vsub.f32 1.0, %v304_v31 }
  0x35   : > { %v270_v12 = vadd.f32 %v269_v10, %v268_v11  ;;  %v296_v30 = vmul.f32 %v576_v25, %v295_v28  ;;  %v306_v36 = vmul.f32 %v578_v29, %v305_v33 }
  0x37   : > { %271 = vadd.xlane.f32.xlu0 %v270_v12  ;;  %v276_v13 = vld.sshfl [vmem:[#allocation1] sm:$0xff pattern:$0x73625140]  ;;  %v277_v14 = vld.sshfl [vmem:[#allocation1 + $0x8] sm:$0xff pattern:$0x73625140]  ;;  %v297_v32 = vadd.f32 %v576_v25, %v296_v30  ;;  %v307_v38 = vadd.f32 %v578_v29, %v306_v36 }
  0x38   : > { %v278_v15 = vld.sshfl [vmem:[#allocation1 + $0x10] sm:$0xff pattern:$0x73625140]  ;;  %v279_v16 = vld.sshfl [vmem:[#allocation1 + $0x18] sm:$0xff pattern:$0x73625140] }
  0x39   : > { %v284_v17 = vsel %vm263_vm0, %v276_v13, 0.0  ;;  %v285_v18 = vsel %vm263_vm0, %v277_v14, 0.0  ;;  %v287_v19 = vsel %vm263_vm0, %v278_v15, 0.0  ;;  %v289_v21 = vsel %vm263_vm0, %v279_v16, 0.0 }
  0x3a   : > { %v286_v20 = vadd.f32 %v285_v18, %v284_v17  ;;  %v299_v35 = vsel %vm298_vm1, %v576_v25, %v297_v32  ;;  %v309_v40 = vsel %vm308_vm2, %v578_v29, %v307_v38 }
  0x3c   : > { %v288_v22 = vadd.f32 %v287_v19, %v286_v20 }
  0x3e   : > { %v290_v23 = vadd.f32 %v289_v21, %v288_v22 }
  0x40   : > { %291 = vadd.xlane.f32.xlu0 %v290_v23 }
  0xaa   : > { %v272_v34 = vpop.xlane.xlu0 %271 }
  0xab   : > { %v300_v37 = vmul.f32 %v299_v35, %v272_v34 }
  0xad   : > { %v301_v39 = vmul.f32 %v300_v37, %v272_v34  ;;  %v329_v54 = vperm.slane %v300_v37, %v328_v51 }
  0xaf   : > { %v331_v57 = vsub.f32 %v890_v0, %v329_v54 }
  0xb3   : > { %v292_v41 = vpop.xlane.xlu0 %291 }
  0xb4   : > { %v302_v42 = vsub.f32 %v292_v41, %v301_v39 }
  0xb6   : > { %v310_v43 = vmul.f32 %v309_v40, %v302_v42 }
  0xb8   : > { %v311_v44 = vmax.f32 %v310_v43, 0.0 }
  0xba   : > { %v312_v45 = vadd.f32 1e-05, %v311_v44 }
  0xbc   : > { %579 = vrsqrt.f32 %v312_v45  ;;  %vm319_vm4 = vweird.f32 %v312_v45 }
  0xc2   : > { %v580_v46 = vpop.eup %579 }
  0xc3   : > { %v314_v49 = vmul.f32 %v580_v46, %v312_v45  ;;  %vm320_vm3 = vweird.f32 %v580_v46 }
  0xc4   : > { %vm321_vm5 = vmor %vm319_vm4, %vm320_vm3 }
  0xc5   : > { %v315_v50 = vmul.f32 %v580_v46, %v314_v49 }
  0xc7   : > { %v316_v52 = vmul.f32 0.5, %v315_v50 }
  0xc9   : > { %v317_v53 = vsub.f32 1.5, %v316_v52 }
  0xcb   : > { %v318_v55 = vmul.f32 %v580_v46, %v317_v53 }
  0xcd   : > { %v322_v56 = vsel %vm321_vm5, %v580_v46, %v318_v55 }
  0xce   : > { %v336_v58 = vperm.slane %v322_v56, %v328_v51 }
  0xd0   : > { %v338_v60 = vmul.f32 %v336_v58, %v331_v57 }
  0xd2   : > { %v339_v62 = vmul.f32 %v338_v60, %v323_v59 }
  0xd4   : > { %v340_v63 = vadd.f32 %v339_v62, %v324_v61 }
  0xd6   : > { %341 = vst [vmem:[%s251_s19] sm:$0xff] %v340_v63 }
  0xd7   : > { %698 = shalt.err (!%p695_p0)
}
  0xd8   : > { %499 = dma.vmem_to_hbm [thread:$0]  (%p856_p2), %s359_s18, 128, %s361_s24, %s343_s15  }
  0xd9 PF: > { %s372_s5 = sand.u32 1, %s737_s12   ;;  %p513_p4 = pnand %p473_p8, %p829_p5 }
  0xda   : > { %s373_s8 = scalar_lea.sflag [#allocation4], %s372_s5 }
  0xdb   : > { %p514_p6 = pneg %p513_p4 }
  0xdd   : > { %732 = dma.done.wait (%p514_p6), %s373_s8, 128  }
  0xde   : > { %734 = vsyncadd (%p514_p6), %s373_s8, 4294967168  ;;  %s20_s17 = sadd.s32 1, %s757_s17   ;;  %s953_s12 = smov %s741_s13 }
  0xdf   : > { %p17_p9 = scmp.ge.s32.totalorder %s20_s17, 4   ;;  %s954_s13 = smov %s745_s14 }
  0xe0   : > { %s955_s14 = smov %s866_s23  ;;  %s956_s15 = smov %s753_s16 }
  0xe1   : > { %s957_s16 = smov %s959_s7  ;;  %19 = sbr.rel (!%p17_p9) target bundleno = 7 (0x7), region = 87 }
  0xe6   :  { %379 = vsyncpa [#allocation3], 1 }
  0xe7   :  { %381 = vsyncpa [#allocation3 + $0x1], 1 }
  0xe8   :  { %382 = vsyncpa [#allocation6], 1 }
  0xe9   :  { %383 = vsyncpa [#allocation4], 1 }
  0xea   :  { %385 = vsyncpa [#allocation4 + $0x1], 1 }

</bundles_post_ra>
